<compile_context>
chip_gen: v6e
topology: v6e:2x2x1
jax: 0.10.0
libtpu: 0.0.40
codegen_flags: <defaults>
</compile_context>

<pallas_src>
import functools
import math

import jax
import jax.numpy as jnp
from jax import lax
from jax.experimental import pallas as pl
from jax.experimental.pallas import tpu as pltpu


# ---------------------------------------------------------------------------
# Stage 1: K / V projection (small, fully parallel)
# ---------------------------------------------------------------------------
def _kv_proj_kernel(x_ref, wk_ref, wv_ref, bk_ref, bv_ref, k_ref, v_ref):
    cdt = wk_ref.dtype
    x = x_ref[0].astype(cdt)                               # (TQ, H)
    k = jnp.dot(x, wk_ref[...], preferred_element_type=jnp.float32) + bk_ref[...]
    v = jnp.dot(x, wv_ref[...], preferred_element_type=jnp.float32) + bv_ref[...]
    k_ref[0] = k.astype(k_ref.dtype)
    v_ref[0] = v.astype(v_ref.dtype)


# ---------------------------------------------------------------------------
# Stage 2: Q proj + per-head softmax attention + output proj + MLP (fused)
# ---------------------------------------------------------------------------
def _attn_mlp_kernel(xq_ref, k_ref, v_ref,
                     wq_ref, wo_ref, bq_ref, bo_ref,
                     w1x_ref, w1a_ref, b1_ref,
                     w2_ref, b2_ref,
                     hidden_ref,
                     *, num_heads, exp_dtype):
    """One (batch b, query-tile qt) grid step — fully independent (no carry).

    xq_ref:      (1, TQ, H) query tile of the descriptors (compute dtype)
    k_ref/v_ref: (1, N, H)  full-sequence K / V of batch b (compute dtype)
    w*_ref:      pre-transposed weights, (in, out) layout, compute dtype
                 (1/sqrt(d) already folded into wq/bq; BN folded into w1/b1)
    b*_ref:      (1, out) biases, f32
    hidden_ref:  (1, TQ, H) MLP output
    """
    cdt = wq_ref.dtype                                     # MXU compute dtype
    xq = xq_ref[0].astype(cdt)                             # (TQ, H)
    k = k_ref[0]                                           # (N, H)
    v = v_ref[0]
    H = xq.shape[-1]
    head_dim = H // num_heads

    # --- Q projection (scale pre-folded into wq/bq) ---
    q = (jnp.dot(xq, wq_ref[...], preferred_element_type=jnp.float32)
         + bq_ref[...]).astype(cdt)                        # (TQ, H)

    wo = wo_ref[...]                                       # (H, H), (in, out)

    # --- per-head attention; accumulate straight into the Wo projection ---
    attn_acc = None
    for h in range(num_heads):
        lo = h * head_dim
        qh = q[:, lo:lo + head_dim]                        # (TQ, d)
        kh = k[:, lo:lo + head_dim]                        # (N, d)
        vh = v[:, lo:lo + head_dim]                        # (N, d)
        # scores = q @ k^T without materializing k^T (contract dim 1 of both).
        scores = lax.dot_general(qh, kh, (((1,), (1,)), ((), ())),
                                 preferred_element_type=jnp.float32)  # (TQ, N)
        m = jnp.max(scores, axis=-1, keepdims=True)
        p = jnp.exp((scores - m).astype(exp_dtype))        # bf16 exp on v6e/v7x
        denom = jnp.sum(p, axis=-1, keepdims=True, dtype=jnp.float32)
        ctx = jnp.dot(p.astype(cdt), vh,
                      preferred_element_type=jnp.float32)  # (TQ, d) unnormalized
        # Deferred softmax normalization on (TQ, d) instead of (TQ, N).
        ctx = ctx * pl.reciprocal(denom, approx=True)
        # Sublane-aligned Wo slice; accumulate (skips the lane concat).
        part = jnp.dot(ctx.astype(cdt), wo[lo:lo + head_dim, :],
                       preferred_element_type=jnp.float32)  # (TQ, H)
        attn_acc = part if attn_acc is None else attn_acc + part
    attn = attn_acc + bo_ref[...]                          # SelfOutput dense

    # --- MLP: concat([x, attn]) @ W1 == x @ W1x + attn @ W1a (no concat) ---
    # BN(eval) affine + running stats already folded into w1x/w1a/b1.
    h1 = (jnp.dot(xq, w1x_ref[...], preferred_element_type=jnp.float32)
          + jnp.dot(attn.astype(cdt), w1a_ref[...], preferred_element_type=jnp.float32)
          + b1_ref[...])
    h1 = jnp.maximum(h1, 0.0)                              # ReLU
    out = jnp.dot(h1.astype(cdt), w2_ref[...],
                  preferred_element_type=jnp.float32) + b2_ref[...]
    hidden_ref[0] = out.astype(hidden_ref.dtype)


def _pick_query_tile(n, target):
    """Largest query tile <= target that divides n, preferring multiples of 16
    (bf16 sublane packing), then 8; falls back to the full n."""
    if n <= target:
        return n
    for align in (16, 8):
        for t in range(target, align - 1, -1):
            if n % t == 0 and t % align == 0:
                return t
    return n


# ---------------------------------------------------------------------------
# Wrapper
# ---------------------------------------------------------------------------
def superglue_attentional_propagation(descriptors, params, *, num_heads,
                                      bn_eps=1e-5, query_tile=256,
                                      compute_dtype=jnp.bfloat16,
                                      exp_dtype=None):
    """Returns the MLP hidden_state output of SuperGlueAttentionalPropagation.

    exp_dtype: dtype for the softmax exp.  Defaults to compute_dtype (bf16 exp
    on v6e/v7x); pass jnp.float32 on v5e (its EUP has no bf16 support).
    """
    B, N, H = descriptors.shape
    H2 = 2 * H
    f32 = jnp.float32
    if exp_dtype is None:
        exp_dtype = compute_dtype
    head_dim = H // num_heads
    scale = 1.0 / math.sqrt(head_dim)

    # ---- host-side weight prep (once, outside the kernels) ------------------
    # Fold BatchNorm1d (eval) running stats + affine into the first MLP linear.
    gamma = params["gamma"][0]
    beta = params["beta"][0]
    mean = params["running_mean"][0]
    var = params["running_var"][0]
    bn_scale = gamma / jnp.sqrt(var + bn_eps)                     # (2H,)
    w1_f = params["w1"] * bn_scale[:, None]                       # (2H_out, 2H_in)
    b1_f = ((params["b1"][0] - mean) * bn_scale + beta)[None, :]  # (1, 2H)

    # Pre-transpose all Linear weights to (in, out); fold 1/sqrt(d) into Wq/bq.
    wq_t = (params["wq"].T * scale).astype(compute_dtype)         # (H, H)
    wk_t = params["wk"].T.astype(compute_dtype)
    wv_t = params["wv"].T.astype(compute_dtype)
    wo_t = params["wo"].T.astype(compute_dtype)
    w1_t = w1_f.T                                                 # (2H_in, 2H_out)
    w1x_t = w1_t[:H].astype(compute_dtype)                        # (H, 2H)  x part
    w1a_t = w1_t[H:].astype(compute_dtype)                        # (H, 2H)  attn part
    w2_t = params["w2"].T.astype(compute_dtype)                   # (2H, H)

    bq = (params["bq"] * scale).astype(f32)
    bk = params["bk"].astype(f32)
    bv = params["bv"].astype(f32)
    bo = params["bo"].astype(f32)
    b1 = b1_f.astype(f32)
    b2 = params["b2"].astype(f32)

    # x only ever feeds the MXU in compute dtype -> cast once on the host
    # (halves the HBM->VMEM DMA and the double-buffered footprint for bf16).
    x_cast = descriptors.astype(compute_dtype)

    # ---- grid / specs --------------------------------------------------------
    tq = _pick_query_tile(N, query_tile)
    grid = (B, N // tq)
    cbytes = jnp.dtype(compute_dtype).itemsize

    def wspec(shape):
        # Constant block index across the whole grid -> fetched once by Pallas.
        return pl.BlockSpec(shape, lambda b, qt: (0,) * len(shape))

    tile_spec = pl.BlockSpec((1, tq, H), lambda b, qt: (b, qt, 0))
    full_seq_spec = pl.BlockSpec((1, N, H), lambda b, qt: (b, 0, 0))

    # ---- Stage 1: K/V projection (both axes parallel) ------------------------
    k_full, v_full = pl.pallas_call(
        _kv_proj_kernel,
        out_shape=(jax.ShapeDtypeStruct((B, N, H), compute_dtype),
                   jax.ShapeDtypeStruct((B, N, H), compute_dtype)),
        grid=grid,
        in_specs=[tile_spec,
                  wspec((H, H)), wspec((H, H)),
                  wspec((1, H)), wspec((1, H))],
        out_specs=[tile_spec, tile_spec],
        compiler_params=pltpu.CompilerParams(
            dimension_semantics=("parallel", "parallel")),
    )(x_cast, wk_t, wv_t, bk, bv)

    # ---- Stage 2: fused attention + MLP (both axes parallel, no carry) -------
    # VMEM budget: double-buffered xq/K/V/output blocks + weights + per-head
    # (TQ, N) score temporaries; right-sized (capped at v7x's 64 MiB per core).
    weight_bytes = (2 * H * H + 2 * H * H2 + H2 * H) * cbytes + (4 * H + 2 * H2) * 4
    vmem_est = (2 * (tq * H * cbytes + 2 * N * H * cbytes)   # xq + K + V
                + 2 * weight_bytes
                + 2 * tq * H * 4                             # output block
                + 6 * tq * N * 4 + 8 * tq * H * 4            # temporaries
                + (8 << 20))                                 # headroom
    vmem_limit = int(min(max(vmem_est, 16 << 20), 64 << 20))

    kernel = functools.partial(_attn_mlp_kernel, num_heads=num_heads,
                               exp_dtype=exp_dtype)

    hidden = pl.pallas_call(
        kernel,
        out_shape=jax.ShapeDtypeStruct((B, N, H), f32),
        grid=grid,
        in_specs=[
            tile_spec,                                  # xq tile
            full_seq_spec, full_seq_spec,               # K, V full sequence of b
            wspec((H, H)), wspec((H, H)),               # wq wo
            wspec((1, H)), wspec((1, H)),               # bq bo
            wspec((H, H2)), wspec((H, H2)), wspec((1, H2)),   # w1x w1a b1
            wspec((H2, H)), wspec((1, H)),              # w2 b2
        ],
        out_specs=tile_spec,
        compiler_params=pltpu.CompilerParams(
            dimension_semantics=("parallel", "parallel"),
            vmem_limit_bytes=vmem_limit,
        ),
    )(x_cast, k_full, v_full,
      wq_t, wo_t, bq, bo,
      w1x_t, w1a_t, b1,
      w2_t, b2)

    return hidden


# ---------------------------------------------------------------------------
# Pure-JAX reference (same math, f32) for the correctness check
# ---------------------------------------------------------------------------
def reference(descriptors, params, *, num_heads, bn_eps=1e-5):
    B, N, H = descriptors.shape
    d = H // num_heads

    def lin(x, w, b):
        return jnp.einsum("bnh,oh->bno", x, w) + b[0]

    q = lin(descriptors, params["wq"], params["bq"]).reshape(B, N, num_heads, d).transpose(0, 2, 1, 3)
    k = lin(descriptors, params["wk"], params["bk"]).reshape(B, N, num_heads, d).transpose(0, 2, 1, 3)
    v = lin(descriptors, params["wv"], params["bv"]).reshape(B, N, num_heads, d).transpose(0, 2, 1, 3)
    scores = jnp.einsum("bhqd,bhkd->bhqk", q, k) / math.sqrt(d)
    probs = jax.nn.softmax(scores, axis=-1)
    ctx = jnp.einsum("bhqk,bhkd->bhqd", probs, v).transpose(0, 2, 1, 3).reshape(B, N, H)
    attn_out = lin(ctx, params["wo"], params["bo"])

    x = jnp.concatenate([descriptors, attn_out], axis=2)
    h = lin(x, params["w1"], params["b1"])
    bn_scale = params["gamma"][0] / jnp.sqrt(params["running_var"][0] + bn_eps)
    h = (h - params["running_mean"][0]) * bn_scale + params["beta"][0]
    h = jnp.maximum(h, 0.0)
    out = lin(h, params["w2"], params["b2"])
    return out, attn_out


# ---------------------------------------------------------------------------
if __name__ == "__main__":
    B, N, H = 2, 8, 32          # batch, keypoints, hidden_size (small demo)
    NUM_HEADS = 4               # hidden_size % num_heads == 0
    H2 = 2 * H

    key = jax.random.PRNGKey(0)
    keys = jax.random.split(key, 18)
    f32 = jnp.float32

    def init(k, shape, scale=0.05):
        return (scale * jax.random.normal(k, shape)).astype(f32)

    params = {
        # SuperGlueSelfAttention q/k/v: Linear(H, H)   (PyTorch (out, in) layout)
        "wq": init(keys[0], (H, H)), "bq": init(keys[1], (1, H)),
        "wk": init(keys[2], (H, H)), "bk": init(keys[3], (1, H)),
        "wv": init(keys[4], (H, H)), "bv": init(keys[5], (1, H)),
        # SuperGlueSelfOutput.dense: Linear(H, H)
        "wo": init(keys[6], (H, H)), "bo": init(keys[7], (1, H)),
        # mlp[0]: SuperGlueMultiLayerPerceptron(2H -> 2H): Linear + BN(eval) + ReLU
        "w1": init(keys[8], (H2, H2)), "b1": init(keys[9], (1, H2)),
        "gamma": (1.0 + init(keys[10], (1, H2))).astype(f32),
        "beta": init(keys[11], (1, H2)),
        "running_mean": init(keys[12], (1, H2), scale=0.1),
        "running_var": jax.random.uniform(keys[13], (1, H2), minval=0.5, maxval=1.5).astype(f32),
        # mlp[1]: final Linear(2H -> H)
        "w2": init(keys[14], (H, H2)), "b2": init(keys[15], (1, H)),
    }

    descriptors = jax.random.normal(keys[16], (B, N, H)).astype(f32)

    ref_out, _ = reference(descriptors, params, num_heads=NUM_HEADS)

    # bf16 MXU + bf16 exp path (default; f32 accumulation, f32 softmax stats).
    out = superglue_attentional_propagation(
        descriptors, params, num_heads=NUM_HEADS, compute_dtype=jnp.bfloat16)
    out = jax.block_until_ready(out)
    assert out.shape == (B, N, H)
    assert jnp.allclose(out, ref_out, atol=3e-2, rtol=3e-2), "bf16 hidden mismatch vs reference"

    # f32 MXU path (tighter tolerance; only the approx reciprocal differs).
    out32 = superglue_attentional_propagation(
        descriptors, params, num_heads=NUM_HEADS,
        compute_dtype=jnp.float32, exp_dtype=jnp.float32)
    out32 = jax.block_until_ready(out32)
    assert jnp.allclose(out32, ref_out, atol=5e-3, rtol=5e-3), "f32 hidden mismatch vs reference"

    print("KERNEL_OK")
</pallas_src>

<mosaic_0001>
module attributes {stable_mosaic.version = 11 : i64} {
  func.func @_kv_proj_kernel(%arg0: i32, %arg1: i32, %arg2: memref<1x8x32xbf16, #tpu.memory_space<vmem>>, %arg3: memref<32x32xbf16, #tpu.memory_space<vmem>>, %arg4: memref<32x32xbf16, #tpu.memory_space<vmem>>, %arg5: memref<1x32xf32, #tpu.memory_space<vmem>>, %arg6: memref<1x32xf32, #tpu.memory_space<vmem>>, %arg7: memref<1x8x32xbf16, #tpu.memory_space<vmem>>, %arg8: memref<1x8x32xbf16, #tpu.memory_space<vmem>>) attributes {dimension_semantics = [#tpu.dimension_semantics<parallel>, #tpu.dimension_semantics<parallel>], iteration_bounds = array<i64: 2, 1>, scalar_prefetch = 0 : i64, scratch_operands = 0 : i64, tpu.core_type = #tpu.core_type<tc>, window_params = [{transform_indices = @transform_0, window_bounds = array<i64: 1, 8, 32>}, {pipeline_mode = #tpu.pipeline_mode<synchronous>, transform_indices = @transform_1, window_bounds = array<i64: 32, 32>}, {pipeline_mode = #tpu.pipeline_mode<synchronous>, transform_indices = @transform_2, window_bounds = array<i64: 32, 32>}, {pipeline_mode = #tpu.pipeline_mode<synchronous>, transform_indices = @transform_3, window_bounds = array<i64: 1, 32>}, {pipeline_mode = #tpu.pipeline_mode<synchronous>, transform_indices = @transform_4, window_bounds = array<i64: 1, 32>}, {transform_indices = @transform_5, window_bounds = array<i64: 1, 8, 32>}, {transform_indices = @transform_6, window_bounds = array<i64: 1, 8, 32>}]} {
    %c0 = arith.constant 0 : index
    %c0_0 = arith.constant 0 : index
    %c0_1 = arith.constant 0 : index
    %0 = vector.load %arg2[%c0, %c0_0, %c0_1] : memref<1x8x32xbf16, #tpu.memory_space<vmem>>, vector<1x8x32xbf16>
    %1 = vector.shape_cast %0 : vector<1x8x32xbf16> to vector<8x32xbf16>
    %c0_2 = arith.constant 0 : index
    %c0_3 = arith.constant 0 : index
    %2 = vector.load %arg3[%c0_2, %c0_3] : memref<32x32xbf16, #tpu.memory_space<vmem>>, vector<32x32xbf16>
    %cst = arith.constant dense<0.000000e+00> : vector<8x32xf32>
    %3 = tpu.matmul %1, %2, %cst {dimension_numbers = #tpu.dot_dimension_numbers<[1], [0], [0], [1], [0, 0, 1, 1], [], []>} : vector<8x32xbf16>, vector<32x32xbf16>, vector<8x32xf32> -> vector<8x32xf32>
    %c0_4 = arith.constant 0 : index
    %c0_5 = arith.constant 0 : index
    %4 = vector.load %arg5[%c0_4, %c0_5] : memref<1x32xf32, #tpu.memory_space<vmem>>, vector<1x32xf32>
    %5 = vector.broadcast %4 : vector<1x32xf32> to vector<8x32xf32>
    %6 = arith.addf %3, %5 : vector<8x32xf32>
    %c0_6 = arith.constant 0 : index
    %c0_7 = arith.constant 0 : index
    %7 = vector.load %arg4[%c0_6, %c0_7] : memref<32x32xbf16, #tpu.memory_space<vmem>>, vector<32x32xbf16>
    %cst_8 = arith.constant dense<0.000000e+00> : vector<8x32xf32>
    %8 = tpu.matmul %1, %7, %cst_8 {dimension_numbers = #tpu.dot_dimension_numbers<[1], [0], [0], [1], [0, 0, 1, 1], [], []>} : vector<8x32xbf16>, vector<32x32xbf16>, vector<8x32xf32> -> vector<8x32xf32>
    %c0_9 = arith.constant 0 : index
    %c0_10 = arith.constant 0 : index
    %9 = vector.load %arg6[%c0_9, %c0_10] : memref<1x32xf32, #tpu.memory_space<vmem>>, vector<1x32xf32>
    %10 = vector.broadcast %9 : vector<1x32xf32> to vector<8x32xf32>
    %11 = arith.addf %8, %10 : vector<8x32xf32>
    %12 = arith.truncf %6 : vector<8x32xf32> to vector<8x32xbf16>
    %c0_11 = arith.constant 0 : index
    %c0_12 = arith.constant 0 : index
    %c0_13 = arith.constant 0 : index
    %13 = vector.load %arg7[%c0_11, %c0_12, %c0_13] : memref<1x8x32xbf16, #tpu.memory_space<vmem>>, vector<1x8x32xbf16>
    %14 = vector.shape_cast %13 : vector<1x8x32xbf16> to vector<8x32xbf16>
    %15 = vector.shape_cast %12 : vector<8x32xbf16> to vector<1x8x32xbf16>
    tpu.vector_store %arg7[%c0_11, %c0_12, %c0_13], %15 {strides = array<i32>} : memref<1x8x32xbf16, #tpu.memory_space<vmem>>, vector<1x8x32xbf16>,
    %16 = arith.truncf %11 : vector<8x32xf32> to vector<8x32xbf16>
    %c0_14 = arith.constant 0 : index
    %c0_15 = arith.constant 0 : index
    %c0_16 = arith.constant 0 : index
    %17 = vector.load %arg8[%c0_14, %c0_15, %c0_16] : memref<1x8x32xbf16, #tpu.memory_space<vmem>>, vector<1x8x32xbf16>
    %18 = vector.shape_cast %17 : vector<1x8x32xbf16> to vector<8x32xbf16>
    %19 = vector.shape_cast %16 : vector<8x32xbf16> to vector<1x8x32xbf16>
    tpu.vector_store %arg8[%c0_14, %c0_15, %c0_16], %19 {strides = array<i32>} : memref<1x8x32xbf16, #tpu.memory_space<vmem>>, vector<1x8x32xbf16>,
    return
  }
  func.func @transform_0(%arg0: i32, %arg1: i32) -> (i32, i32, i32) {
    %c0_i32 = arith.constant 0 : i32
    %c0_i32_0 = arith.constant 0 : i32
    return %arg0, %arg1, %c0_i32 : i32, i32, i32
  }
  func.func @transform_1(%arg0: i32, %arg1: i32) -> (i32, i32) {
    %c0_i32 = arith.constant 0 : i32
    %c0_i32_0 = arith.constant 0 : i32
    %c0_i32_1 = arith.constant 0 : i32
    return %c0_i32, %c0_i32_0 : i32, i32
  }
  func.func @transform_2(%arg0: i32, %arg1: i32) -> (i32, i32) {
    %c0_i32 = arith.constant 0 : i32
    %c0_i32_0 = arith.constant 0 : i32
    %c0_i32_1 = arith.constant 0 : i32
    return %c0_i32, %c0_i32_0 : i32, i32
  }
  func.func @transform_3(%arg0: i32, %arg1: i32) -> (i32, i32) {
    %c0_i32 = arith.constant 0 : i32
    %c0_i32_0 = arith.constant 0 : i32
    %c0_i32_1 = arith.constant 0 : i32
    return %c0_i32, %c0_i32_0 : i32, i32
  }
  func.func @transform_4(%arg0: i32, %arg1: i32) -> (i32, i32) {
    %c0_i32 = arith.constant 0 : i32
    %c0_i32_0 = arith.constant 0 : i32
    %c0_i32_1 = arith.constant 0 : i32
    return %c0_i32, %c0_i32_0 : i32, i32
  }
  func.func @transform_5(%arg0: i32, %arg1: i32) -> (i32, i32, i32) {
    %c0_i32 = arith.constant 0 : i32
    %c0_i32_0 = arith.constant 0 : i32
    return %arg0, %arg1, %c0_i32 : i32, i32, i32
  }
  func.func @transform_6(%arg0: i32, %arg1: i32) -> (i32, i32, i32) {
    %c0_i32 = arith.constant 0 : i32
    %c0_i32_0 = arith.constant 0 : i32
    return %arg0, %arg1, %c0_i32 : i32, i32, i32
  }
}

</mosaic_0001>

<bundles_post_ra>
// kernel: tpu_custom_call.1
= control target key start
LH: loop header
LB: loop body
LE: loop exit
PB: predicated region body
PF: predicated region fallthrough
CT: control target
= control target key end

     0   :  { %s1246_s0 = inlined_call_operand.hbm [shape: bf16[2,8,32], index: 0, kind: input, shape index: {}]   ;;  %s1247_s1 = inlined_call_operand.hbm [shape: bf16[32,32], index: 1, kind: input, shape index: {}]   ;;  %s1248_s2 = inlined_call_operand.hbm [shape: bf16[32,32], index: 2, kind: input, shape index: {}]   ;;  %s1249_s3 = inlined_call_operand.vmem [shape: f32[1,32], index: 3, kind: input, shape index: {}]   ;;  %s1250_s4 = inlined_call_operand.vmem [shape: f32[1,32], index: 4, kind: input, shape index: {}]   ;;  %s1251_s5 = inlined_call_operand.hbm [shape: bf16[2,8,32], index: 5, kind: output, shape index: {0}]   ;;  %s1252_s6 = inlined_call_operand.hbm [shape: bf16[2,8,32], index: 6, kind: output, shape index: {1}]  }
   0x1   :  { %1256 = sst [smem:[#allocation15_spill]] %s1247_s1 }
   0x2   :  { %1257 = sst [smem:[#allocation16_spill]] %s1248_s2 }
   0x3   :  { %12 = vsyncpa [#allocation3], 0 }
   0x4   :  { %14 = vsyncpa [#allocation3 + $0x1], 0 }
   0x5   :  { %15 = vsyncpa [#allocation6], 0 }
   0x6   :  { %16 = vsyncpa [#allocation4], 0 }
   0x7   :  { %18 = vsyncpa [#allocation4 + $0x1], 0 }
   0x8   :  { %19 = vsyncpa [#allocation10], 0 }
   0x9   :  { %21 = vsyncpa [#allocation10 + $0x1], 0  ;;  %s1015_s21 = smov 0   ;;  %s1017_s22 = smov 0  }
   0xa   :  { %s1019_s23 = smov 0   ;;  %s1021_s24 = smov 0  }
   0xb   :  { %s1023_s25 = smov 0   ;;  %s1025_s26 = smov 0  }
   0xc LB: > { %s629_s27 = sadd.s32 4294967295, %s969_s26   ;;  %s630_s28 = sadd.s32 4294967294, %s969_s26   ;;  %s969_s26 = sphi %s1025_s26, %s27_s26   ;;  %s965_s25 = sphi %s1023_s25, %s1276_s25   ;;  %s961_s24 = sphi %s1021_s24, %s1275_s24   ;;  %s957_s23 = sphi %s1019_s23, %s1274_s23   ;;  %s953_s22 = sphi %s1017_s22, %s1273_s22   ;;  %s949_s21 = sphi %s1015_s21, %s1272_s21  }
   0xd   : > { %p61_p0 = scmp.ne.s32.totalorder %s953_s22, %s949_s21  ;;  %p1049_p1 = scmp.eq.s32.totalorder %s629_s27, 0 }
   0xe   : > { %p1053_p2 = scmp.eq.s32.totalorder %s629_s27, 1  ;;  %p177_p3 = scmp.eq.s32.totalorder %s630_s28, 1 }
   0xf   : > { %s1258_s29 = scalar_select %p1049_p1, 1, 0 }
  0x10   : > { %p1059_p4 = por %p1049_p1, %p61_p0  ;;  %p631_p5 = scmp.ge.s32.totalorder %s969_s26, 1 }
  0x11   : > { %p1064_p6 = por %p177_p3, %p61_p0  ;;  %p212_p7 = scmp.lt.s32.totalorder %s969_s26, 3 }
  0x12   : > { %s1260_s7 = scalar_select %p1059_p4, 1, 0 }
  0x13   : > { %s1261_s8 = scalar_select %p1064_p6, 1, 0 }
  0x14   : > { %p1069_p8 = pnand %p631_p5, %p212_p7  ;;  %s971_s10 = smov [#allocation5]  }
  0x15   : > { %s224_s11 = sshll.u32 %s971_s10, 4  ;;  %s972_s13 = smov [#allocation7]   ;;  %s225_s11 = int_to_ptr.vmem [resolvable:$true] %s224_s11 }
  0x16   : > { %p693_p9 = pneg %p1069_p8  ;;  %s237_s14 = sshll.u32 %s972_s13, 4  ;;  %s238_s14 = int_to_ptr.vmem [resolvable:$true] %s237_s14 }
  0x17   : > { %s786_s15 = scalar_lea.vmem %s225_s11, 256  ;;  %p794_p5 = scmp.lt.s32.totalorder %s225_s11, %s225_s11 }
  0x18   : > { %p1078_p11 = pnand %p693_p9, %p1049_p1  ;;  %p787_p13 = scmp.ne.s32.totalorder %s225_s11, %s786_s15 }
  0x19   : > { %p795_p7 = scmp.lt.s32.totalorder %s786_s15, %s786_s15 }
  0x1a   : > { %p777_p12 = pneg %p1078_p11 }
  0x1b   : > { %p796_p10 = por %p795_p7, %p794_p5 }
  0x1c   : > { %p789_p0 = pnand %p787_p13, %p777_p12 }
  0x1e   : > { %p790_p3 = pneg %p789_p0 }
  0x20   : > { %p797_p9 = pnand %p796_p10, %p790_p3 }
  0x22   : > { %800 = shalt.err (!%p797_p9)
}
  0x23   : > { %s973_s16 = smov 64   ;;  %s974_s17 = smov 4  }
  0x24   : > { %s1264_s1 = sld [smem:[#allocation15_spill]]  ;;  %s812_s20 = scalar_lea.vmem %s238_s14, 256 }
  0x25   : > { %p813_p6 = scmp.ne.s32.totalorder %s238_s14, %s812_s20  ;;  %p820_p1 = scmp.lt.s32.totalorder %s238_s14, %s238_s14 }
  0x26   : > { %p821_p4 = scmp.lt.s32.totalorder %s812_s20, %s812_s20 }
  0x27   : > { %p815_p13 = pnand %p813_p6, %p777_p12 }
  0x28   : > { %p822_p5 = por %p821_p4, %p820_p1 }
  0x29   : > { %p816_p0 = pneg %p815_p13 }
  0x2a   : > { %696 = dma.hbm_to_vmem [thread:$0]  (!%p1078_p11), %s1264_s1, 256, %s225_s11, [#allocation6], %s973_s16, %s973_s16, %s974_s17  }
  0x2b   : > { %p823_p10 = pnand %p822_p5, %p816_p0 }
  0x2d   : > { %826 = shalt.err (!%p823_p10)
}
  0x2e   : > { %s1265_s2 = sld [smem:[#allocation16_spill]]  ;;  %s39_s10 = sadd.s32 1, %s965_s25 }
  0x2f   : > { %s48_s11 = sadd.s32 1, %s957_s23  ;;  %p41_p1 = scmp.ge.s32.totalorder %s39_s10, 2 }
  0x30   : > { %p55_p4 = scmp.ne.s32.totalorder %s957_s23, %s953_s22  ;;  %p56_p6 = scmp.eq.s32.totalorder %s969_s26, 0 }
  0x31   : > { %p713_p12 = scmp.lt.s32.totalorder %s969_s26, 2  ;;  %s1278_s10 = smov (%p41_p1, %s39_s10), 0 }
  0x32   : > { %p57_p3 = por %p56_p6, %p55_p4  ;;  %p1110_p7 = por %p1053_p2, %p55_p4 }
  0x33   : > { %s43_s13 = ssub.s32 %s965_s25, %s1278_s10  ;;  %s257_s15 = sand.u32 1, %s957_s23  }
  0x34   : > { %699 = dma.hbm_to_vmem [thread:$0]  (!%p1078_p11), %s1265_s2, 256, %s238_s14, [#allocation6], %s973_s16, %s973_s16, %s974_s17  }
  0x35   : > { %p46_p9 = scmp.eq.s32.totalorder %s43_s13, 0  ;;  %s635_s14 = sshll.u32 %s257_s15, 2 }
  0x36   : > { %s636_s16 = sshll.u32 %s965_s25, 6  ;;  %s261_s27 = scalar_lea.vmem [#allocation2], %s635_s14 }
  0x37   : > { %s1119_s17 = scalar_select %p46_p9, %s957_s23, %s48_s11  }
  0x38   : > { %s267_s20 = scalar_lea.hbm %s1246_s0, %s636_s16  ;;  %s269_s28 = sshll.u32 %s261_s27, 4  ;;  %s270_s28 = int_to_ptr.vmem [resolvable:$true] %s269_s28 }
  0x39   : > { %p1126_p11 = pnand %p713_p12, %p57_p3  ;;  %s258_s1 = scalar_lea.sflag [#allocation3], %s257_s15 }
  0x3a   : > { %s840_s13 = scalar_lea.vmem %s270_s28, 64  ;;  %s975_s11 = smov [#allocation2]  }
  0x3b   : > { %p829_p2 = pneg %p1126_p11  ;;  %p841_p13 = scmp.ne.s32.totalorder %s270_s28, %s840_s13 }
  0x3c   : > { %s845_s2 = sshll.u32 %s975_s11, 4  ;;  %s846_s2 = int_to_ptr.vmem [resolvable:$false] %s845_s2 }
  0x3d   : > { %p843_p0 = pnand %p841_p13, %p829_p2  ;;  %s847_s16 = scalar_lea.vmem %s846_s2, 128 }
  0x3e   : > { %p848_p10 = scmp.lt.s32.totalorder %s270_s28, %s846_s2  ;;  %p849_p1 = scmp.lt.s32.totalorder %s847_s16, %s840_s13 }
  0x3f   : > { %p844_p5 = pneg %p843_p0 }
  0x40   : > { %p850_p4 = por %p849_p1, %p848_p10 }
  0x42   : > { %p851_p6 = pnand %p850_p4, %p844_p5 }
  0x44   : > { %854 = shalt.err (!%p851_p6)
}
  0x45   : > { %703 = dma.hbm_to_vmem [thread:$0]  (!%p1126_p11), %s267_s20, 64, %s270_s28, %s258_s1  }
  0x46   : > { %278 = sbr.rel (%p1069_p8) target bundleno = 322 (0x142), region = 40  ;;  %s1137_s15 = sand.u32 (!%p1069_p8), 1, %s953_s22  }
  0x47   : > { %s1140_s14 = sshll.u32 (!%p1069_p8), %s1137_s15, 2  ;;  %s281_s2 = scalar_lea.sflag (!%p1069_p8), [#allocation3], %s1137_s15 }
  0x48   : > { %s284_s18 = scalar_lea.vmem (!%p1069_p8), [#allocation2], %s1140_s14  ;;  %p1268_p12 = scmp.ne.s32.totalorder (!%p1069_p8), %s1260_s7, 0 }
  0x4b   : > { %932 = dma.done.wait (%p1268_p12), %s281_s2, 64  }
  0x4c   : > { %934 = vsyncadd (%p1268_p12), %s281_s2, 4294967232  ;;  %p1269_p3 = scmp.ne.s32.totalorder %s1258_s29, 0 }
  0x4e   : > { %936 = dma.done.wait (%p1269_p3), [#allocation6], 512  }
  0x4f   : > { %938 = vsyncadd (%p1269_p3), [#allocation6], 4294966784  ;;  %v976_v0 = vmov 0.0   ;;  %vm977_vm0 = vmmov 0   ;;  %v771_v1 = vld [vmem:[#allocation5 + $0x8] sm:$0xff]   ;;  %v772_v2 = vld [vmem:[#allocation7 + $0x8] sm:$0xff]  }
  0x50   : > { %663 = vmatprep.subr.bf16.mxu0 %v976_v0  ;;  %671 = vmatprep.subr.bf16.mxu1 %v976_v0  ;;  %v773_v3 = vld [vmem:[#allocation5] sm:$0xff]   ;;  %v774_v4 = vld [vmem:[#allocation7] sm:$0xff]   ;;  %v327_v5 = vld [vmem:[%s284_s18] sm:$0xf]  ;;  %vm351_vm1 = vcmask 261120   ;;  %s653_s19 = sshll.u32 %s961_s24, 6 }
  0x51   : > { %667 = vmatprep.mubr.msk.bf16.mxu0 %vm977_vm0, %v976_v0  ;;  %675 = vmatprep.mubr.msk.bf16.mxu1 %vm977_vm0, %v976_v0  ;;  %v643_v6 = vld [vmem:[%s1249_s3] ss:$0 sm:$0xff]  ;;  %s318_s20 = scalar_lea.vmem [#allocation8], %s1140_s14  ;;  %s325_s28 = scalar_lea.vmem [#allocation9], %s1140_s14  ;;  %vm459_vm2 = vcmask 257024  }
  0x52   : > { %664 = vmatpush3.bf16.msra.mxu0 %v771_v1  ;;  %672 = vmatpush3.bf16.msra.mxu1 %v772_v2  ;;  %v647_v7 = vld [vmem:[%s1250_s4] ss:$0 sm:$0xff]  ;;  %s483_s27 = sshll.u32 %s318_s20, 4  ;;  %s497_s30 = sshll.u32 %s325_s28, 4  ;;  %s1168_s27 = int_to_ptr.vmem [resolvable:$true] %s483_s27  ;;  %s1175_s30 = int_to_ptr.vmem [resolvable:$true] %s497_s30 }
  0x53   : > { %665 = vmatprep.subr.bf16.mxu0 %v976_v0  ;;  %673 = vmatprep.subr.bf16.mxu1 %v976_v0  ;;  %s1166_s16 = scalar_lea.hbm %s1251_s5, %s653_s19  ;;  %s1173_s18 = scalar_lea.hbm %s1252_s6, %s653_s19 }
  0x54   : > { %s464_s1 = scalar_lea.sflag [#allocation4], %s1137_s15  ;;  %s855_s29 = scalar_lea.vmem %s1168_s27, 64 }
  0x55   : > { %p856_p8 = scmp.ne.s32.totalorder %s1168_s27, %s855_s29  ;;  %s978_s7 = smov [#allocation8]  }
  0x56   : > { %666 = vmatpush3.bf16.msra.mxu0 %v773_v3  ;;  %674 = vmatpush3.bf16.msra.mxu1 %v774_v4  ;;  %s859_s9 = sshll.u32 %s978_s7, 4  ;;  %s860_s9 = int_to_ptr.vmem [resolvable:$false] %s859_s9 }
  0x57   : > { %p857_p9 = pnand %p856_p8, %p1110_p7  ;;  %s861_s13 = scalar_lea.vmem %s860_s9, 128 }
  0x58   : > { %p862_p2 = scmp.lt.s32.totalorder %s1168_s27, %s860_s9  ;;  %p863_p13 = scmp.lt.s32.totalorder %s861_s13, %s855_s29 }
  0x59   : > { %668 = vmatmul.mubr.msk.bf16.vlgmr.msra.gmra.mxu0 %vm351_vm1, %v327_v5  ;;  %676 = vmatmul.mubr.msk.bf16.vlgmr.msra.gmra.mxu1 %vm351_vm1, %v327_v5  ;;  %p858_p11 = pneg %p857_p9 }
  0x5a   : > { %p864_p0 = por %p863_p13, %p862_p2 }
  0x5c   : > { %p865_p5 = pnand %p864_p0, %p858_p11 }
 0x119   : > { %v389_v8 = vpop.f32.mrf.mxu0  ;;  %v452_v10 = vpop.f32.mrf.mxu1 }
 0x11a   : > { %v390_v9 = vadd.f32 %v643_v6, %v389_v8  ;;  %v453_v11 = vadd.f32 %v647_v7, %v452_v10 }
 0x11b   : > { %v669_v12 = vpop.f32.mrf.mxu0  ;;  %v677_v14 = vpop.f32.mrf.mxu1 }
 0x11c   : > { %v458_v13 = vpack.c.bf16 %v390_v9, %v390_v9  ;;  %v461_v15 = vpack.c.bf16 %v453_v11, %v453_v11 }
 0x11d   : > { %v392_v16 = vpop.f32.mrf.mxu0  ;;  %v455_v17 = vpop.f32.mrf.mxu1 }
 0x11e   : > { %460 = vst.msk [vmem:[%s318_s20] sm:$0xf] %vm459_vm2, %v458_v13 }
 0x11f   : > { %v670_v18 = vpop.f32.mrf.mxu0 }
 0x120   : > { %868 = shalt.err (!%p865_p5)
}
 0x121   : > { %s869_s19 = scalar_lea.hbm %s1166_s16, 64  ;;  %s873_s24 = scalar_lea.hbm %s1251_s5, 128 }
 0x122   : > { %p870_p10 = scmp.ne.s32.totalorder %s1166_s16, %s869_s19  ;;  %p874_p6 = scmp.lt.s32.totalorder %s1166_s16, %s1251_s5 }
 0x123   : > { %p875_p12 = scmp.lt.s32.totalorder %s873_s24, %s869_s19 }
 0x124   : > { %p871_p1 = pnand %p870_p10, %p1110_p7 }
 0x125   : > { %p876_p3 = por %p875_p12, %p874_p6 }
 0x126   : > { %p872_p4 = pneg %p871_p1 }
 0x128   : > { %p877_p8 = pnand %p876_p3, %p872_p4 }
 0x12a   : > { %880 = shalt.err (!%p877_p8)
}
 0x12b   : > { %689 = dma.vmem_to_hbm [thread:$0]  (%p1110_p7), %s1168_s27, 64, %s1166_s16, %s464_s1   ;;  %462 = vst.msk [vmem:[%s325_s28] sm:$0xf] %vm459_vm2, %v461_v15  ;;  %v678_v19 = vpop.f32.mrf.mxu1 }
 0x12c   : > { %s469_s29 = scalar_lea.sflag [#allocation10], %s1137_s15  ;;  %s881_s9 = scalar_lea.vmem %s1175_s30, 64 }
 0x12d   : > { %p882_p9 = scmp.ne.s32.totalorder %s1175_s30, %s881_s9  ;;  %s979_s13 = smov [#allocation9]  }
 0x12e   : > { %s885_s19 = sshll.u32 %s979_s13, 4  ;;  %s886_s19 = int_to_ptr.vmem [resolvable:$false] %s885_s19 }
 0x12f   : > { %p883_p11 = pnand %p882_p9, %p1110_p7  ;;  %s887_s20 = scalar_lea.vmem %s886_s19, 128 }
 0x130   : > { %p888_p13 = scmp.lt.s32.totalorder %s1175_s30, %s886_s19  ;;  %p889_p0 = scmp.lt.s32.totalorder %s887_s20, %s881_s9 }
 0x131   : > { %p884_p2 = pneg %p883_p11 }
 0x132   : > { %p890_p5 = por %p889_p0, %p888_p13 }
 0x134   : > { %p891_p10 = pnand %p890_p5, %p884_p2 }
 0x136   : > { %894 = shalt.err (!%p891_p10)
}
 0x137   : > { %s895_s14 = scalar_lea.hbm %s1173_s18, 64  ;;  %s899_s28 = scalar_lea.hbm %s1252_s6, 128 }
 0x138   : > { %p896_p1 = scmp.ne.s32.totalorder %s1173_s18, %s895_s14  ;;  %p900_p12 = scmp.lt.s32.totalorder %s1173_s18, %s1252_s6 }
 0x139   : > { %p901_p3 = scmp.lt.s32.totalorder %s899_s28, %s895_s14 }
 0x13a   : > { %p897_p4 = pnand %p896_p1, %p1110_p7 }
 0x13b   : > { %p902_p8 = por %p901_p3, %p900_p12 }
 0x13c   : > { %p898_p6 = pneg %p897_p4 }
 0x13e   : > { %p903_p9 = pnand %p902_p8, %p898_p6 }
 0x140   : > { %906 = shalt.err (!%p903_p9)
}
 0x141   : > { %690 = dma.vmem_to_hbm [thread:$0]  (%p1110_p7), %s1175_s30, 64, %s1173_s18, %s469_s29  }
 0x142 PF: > { %s509_s11 = sand.u32 1, %s949_s21   ;;  %p1270_p11 = scmp.ne.s32.totalorder %s1261_s8, 0 }
 0x143   : > { %p1271_p2 = scmp.ge.s32.totalorder %s969_s26, 2  ;;  %s510_s24 = scalar_lea.sflag [#allocation4], %s509_s11 }
 0x145   : > { %p705_p13 = pnand %p1271_p2, %p1270_p11 }
 0x147   : > { %p706_p0 = pneg %p705_p13 }
 0x149   : > { %940 = dma.done.wait (%p706_p0), %s510_s24, 64  }
 0x14a   : > { %942 = vsyncadd (%p706_p0), %s510_s24, 4294967232  ;;  %s519_s2 = scalar_lea.sflag [#allocation10], %s509_s11 }
 0x14b   : > { %944 = dma.done.wait (%p706_p0), %s519_s2, 64  }
 0x14c   : > { %946 = vsyncadd (%p706_p0), %s519_s2, 4294967232  ;;  %s27_s26 = sadd.s32 1, %s969_s26   ;;  %s1272_s21 = smov %s953_s22 }
 0x14d   : > { %p24_p5 = scmp.ge.s32.totalorder %s27_s26, 4   ;;  %s1273_s22 = smov %s957_s23 }
 0x14e   : > { %s1274_s23 = smov %s1119_s17  ;;  %s1275_s24 = smov %s965_s25 }
 0x14f   : > { %s1276_s25 = smov %s1278_s10  ;;  %26 = sbr.rel (!%p24_p5) target bundleno = 12 (0xc), region = 110 }
 0x154   :  { %524 = vsyncpa [#allocation3], 1 }
 0x155   :  { %526 = vsyncpa [#allocation3 + $0x1], 1 }
 0x156   :  { %527 = vsyncpa [#allocation6], 1 }
 0x157   :  { %528 = vsyncpa [#allocation4], 1 }
 0x158   :  { %530 = vsyncpa [#allocation4 + $0x1], 1 }
 0x159   :  { %531 = vsyncpa [#allocation10], 1 }
 0x15a   :  { %533 = vsyncpa [#allocation10 + $0x1], 1 }

</bundles_post_ra>
